<compile_context>
chip_gen: v7x
topology: tpu7x:2x2x1
jax: 0.10.0
libtpu: 0.0.40
codegen_flags: <defaults>
</compile_context>

<pallas_src>
import math

import jax
import jax.numpy as jnp
from jax.experimental import pallas as pl
from jax.experimental.pallas import tpu as pltpu


# ---------------------------------------------------------------------------
# Parameter setup (mirrors the PyTorch buffer construction, float32).
# ---------------------------------------------------------------------------
def _build_pe_table(model_dimension: int, max_len: int = 500) -> jnp.ndarray:
    position = jnp.arange(max_len, dtype=jnp.float32)[:, None]            # (L, 1)
    div_term = jnp.exp(
        jnp.arange(0, model_dimension, 2, dtype=jnp.float32)
        * (-math.log(10000.0) / model_dimension)
    )                                                                     # (D/2,)
    angles = position * div_term                                          # (L, D/2)
    pe = jnp.zeros((max_len, model_dimension), dtype=jnp.float32)
    pe = pe.at[:, 0::2].set(jnp.sin(angles))
    pe = pe.at[:, 1::2].set(jnp.cos(angles))
    return pe[None, :, :]                                                 # (1, L, D)


# ---------------------------------------------------------------------------
# Kernel: one generic body, works for both layouts via broadcasting.
#   lane-dense path: x (TB, TL), mask (TB, TL) int8, pe (1, TL)
#   3-D path:        x (TB, TS, D), mask (TB, TS, 1) int8, pe (1, TS, D)
# ---------------------------------------------------------------------------
def _pos_enc_kernel(x_ref, mask_ref, pe_ref, o_ref):
    x = x_ref[...]
    keep = mask_ref[...] != 0
    o_ref[...] = jnp.where(keep, x, jnp.zeros_like(x)) + pe_ref[...]


# ---------------------------------------------------------------------------
# Tile sizing helpers (padded-VMEM aware, generation aware).
# ---------------------------------------------------------------------------
def _round_up(n: int, m: int) -> int:
    return ((n + m - 1) // m) * m


def _vmem_budget_bytes() -> int:
    """Total double-buffered VMEM footprint budget for all pipelined tiles."""
    kind = ""
    try:
        kind = jax.devices()[0].device_kind.lower()
    except Exception:
        pass
    if "v5" in kind or "v4" in kind or "v3" in kind:
        return 12 << 20     # v5e: 16 MiB scoped default, 2 MiB tiles already at roofline
    if "v7" in kind:
        return 40 << 20     # v7x: 64 MiB physical VMEM, want ~6-8 MiB x tiles
    return 32 << 20         # v6e and unknown generations


def _choose_tiles_2d(B, L, itemsize, budget):
    """Tiles for the lane-dense (B, S*D) layout.  Returns (tb, tl)."""
    sub_x = 16 if itemsize == 2 else 8          # sublane multiple for x dtype

    def per_lane_bytes(tb):
        # double-buffered: x + out (sublane-padded) + int8 mask (padded to 32
        # sublanes) + PE row, per unit of TL.
        return 2 * (2 * _round_up(tb, sub_x) * itemsize
                    + _round_up(tb, 32)
                    + sub_x * itemsize)

    tb = B
    tl = (budget // per_lane_bytes(tb)) // 128 * 128
    if tl >= L:
        tl = L
        if L >= 256:
            # whole array fits in one tile: still emit >= 2 parallel tiles so
            # v7x's second TensorCore gets work.
            tl = _round_up(pl.cdiv(L, 2), 128)
        elif B >= 64:
            tb = _round_up(pl.cdiv(B, 2), 32)
        return tb, tl
    if tl >= 128:
        return tb, tl
    # Batch dim alone is too fat for the budget: tile batch as well (tb must be
    # a multiple of 32 for the int8 mask block, or the full batch).
    tl = 128
    tb = max(32, ((budget // (2 * tl) - sub_x * itemsize)
                  // (2 * itemsize + 1)) // 32 * 32)
    return min(tb, B), tl


def _choose_tiles_3d(B, S, D, itemsize, budget):
    """Tiles for the (B, S, D) layout (D % 128 == 0).  Returns (tb, ts)."""
    sub = 32                                    # satisfies f32 / bf16 x and int8 mask

    def per_ts_bytes(tb):
        # double-buffered: x + out (D lane-aligned) + mask padded to 128 lanes + PE
        return 2 * (2 * tb * D * itemsize + tb * 128 + D * itemsize)

    ts = budget // per_ts_bytes(B)
    if ts >= S:
        tb, ts = B, S
        if S >= 2 * sub:                        # >= 2 parallel tiles for megacore
            ts = _round_up(pl.cdiv(S, 2), sub)
        elif B >= 2:
            tb = pl.cdiv(B, 2)
        return tb, ts
    if ts >= sub:
        return B, (ts // sub) * sub
    # Rows are too fat even at ts = 32: tile the batch too.
    ts = min(S, sub)
    tb = max(1, (budget // (2 * ts) - D * itemsize) // (2 * D * itemsize + 128))
    return min(tb, B), ts


def _vmem_limit(footprint_bytes: int) -> int:
    return int(min(48 << 20, max(32 << 20, footprint_bytes + (8 << 20))))


# ---------------------------------------------------------------------------
# Forward paths.
# ---------------------------------------------------------------------------
def _forward_lane_dense(x, keep, pe, budget):
    """D not a multiple of 128: fold S*D onto the lane axis (lane-dense stores)."""
    B, S, D = x.shape
    L = S * D
    itemsize = jnp.dtype(x.dtype).itemsize
    tb, tl = _choose_tiles_2d(B, L, itemsize, budget)

    x2 = x.reshape(B, L)
    mask2 = jnp.broadcast_to(keep[:, :, None], (B, S, D)).astype(jnp.int8).reshape(B, L)
    pe2 = pe.reshape(1, L)                       # already x.dtype

    sub_x = 16 if itemsize == 2 else 8
    footprint = 2 * tl * (2 * _round_up(tb, sub_x) * itemsize
                          + _round_up(tb, 32) + sub_x * itemsize)

    # L tiles on the outer grid axis, batch tiles inner: the PE block index
    # depends only on the L tile, so PE stays resident across batch tiles.
    grid = (pl.cdiv(L, tl), pl.cdiv(B, tb))

    out = pl.pallas_call(
        _pos_enc_kernel,
        out_shape=jax.ShapeDtypeStruct((B, L), x.dtype),
        grid_spec=pltpu.PrefetchScalarGridSpec(
            num_scalar_prefetch=0,
            grid=grid,
            in_specs=[
                pl.BlockSpec((tb, tl), lambda l, b: (b, l)),   # x
                pl.BlockSpec((tb, tl), lambda l, b: (b, l)),   # mask (int8)
                pl.BlockSpec((1, tl), lambda l, b: (0, l)),    # pe
            ],
            out_specs=pl.BlockSpec((tb, tl), lambda l, b: (b, l)),
        ),
        compiler_params=pltpu.CompilerParams(
            dimension_semantics=("parallel", "parallel"),
            vmem_limit_bytes=_vmem_limit(footprint),
        ),
    )(x2, mask2, pe2)
    return out.reshape(B, S, D)


def _forward_3d(x, keep, pe, budget):
    """D a multiple of 128: already lane-dense, mask stays (B, S, 1) (no expansion)."""
    B, S, D = x.shape
    itemsize = jnp.dtype(x.dtype).itemsize
    tb, ts = _choose_tiles_3d(B, S, D, itemsize, budget)

    mask_i8 = keep.astype(jnp.int8)[:, :, None]   # (B, S, 1)
    pe3 = pe[None, :, :]                          # (1, S, D), x.dtype

    footprint = 2 * ts * (2 * tb * D * itemsize + tb * 128 + D * itemsize)
    grid = (pl.cdiv(S, ts), pl.cdiv(B, tb))       # S tiles outer -> PE resident over batch

    return pl.pallas_call(
        _pos_enc_kernel,
        out_shape=jax.ShapeDtypeStruct((B, S, D), x.dtype),
        grid_spec=pltpu.PrefetchScalarGridSpec(
            num_scalar_prefetch=0,
            grid=grid,
            in_specs=[
                pl.BlockSpec((tb, ts, D), lambda s, b: (b, s, 0)),   # x
                pl.BlockSpec((tb, ts, 1), lambda s, b: (b, s, 0)),   # mask (int8)
                pl.BlockSpec((1, ts, D), lambda s, b: (0, s, 0)),    # pe
            ],
            out_specs=pl.BlockSpec((tb, ts, D), lambda s, b: (b, s, 0)),
        ),
        compiler_params=pltpu.CompilerParams(
            dimension_semantics=("parallel", "parallel"),
            vmem_limit_bytes=_vmem_limit(footprint),
        ),
    )(x, mask_i8, pe3)


def positional_encoding_forward(x: jnp.ndarray,
                                mask: jnp.ndarray,
                                pe_table: jnp.ndarray) -> jnp.ndarray:
    """
    x:        (B, S, D) float
    mask:     (B, S)    any numeric dtype (exactly-zero entries are masked)
    pe_table: (1, L, D) float32, L >= S
    returns   (B, S, D) with x.dtype
    """
    B, S, D = x.shape
    L = pe_table.shape[-2]
    if S > L:
        raise ValueError(f"sequence length {S} exceeds PE max_len {L}")

    pe = pe_table.reshape(L, D)[:S].astype(x.dtype)    # (S, D), cast to x.dtype
    keep = (mask != 0)                                  # exact PyTorch '== 0' semantics
    budget = _vmem_budget_bytes()

    if D % 128 == 0:
        return _forward_3d(x, keep, pe, budget)
    return _forward_lane_dense(x, keep, pe, budget)


if __name__ == "__main__":
    # Small shapes consistent with the module's forward:
    #   batch=2, seq=8, model_dimension=32
    B, S, D = 2, 8, 32
    MAX_LEN = 500

    key = jax.random.PRNGKey(0)
    kx, km = jax.random.split(key)
    x = jax.random.normal(kx, (B, S, D), dtype=jnp.float32)
    # deterministic mask with some zeros (padded positions)
    mask = (jax.random.uniform(km, (B, S)) > 0.3).astype(jnp.int32)

    pe_table = _build_pe_table(D, MAX_LEN)

    out = positional_encoding_forward(x, mask, pe_table)
    out = jax.block_until_ready(out)

    # Pure-JAX reference for sanity check.
    ref = jnp.where(mask[:, :, None] != 0, x, 0.0) + pe_table[:, :S, :]
    assert out.shape == (B, S, D)
    assert out.dtype == jnp.float32
    assert jnp.allclose(out, ref, atol=1e-6, rtol=1e-6)

    print("KERNEL_OK")
</pallas_src>

<mosaic_0001>
module attributes {stable_mosaic.version = 11 : i64} {
  func.func @_pos_enc_kernel(%arg0: i32, %arg1: i32, %arg2: memref<2x128xf32, #tpu.memory_space<vmem>>, %arg3: memref<2x128xi8, #tpu.memory_space<vmem>>, %arg4: memref<1x128xf32, #tpu.memory_space<vmem>>, %arg5: memref<2x128xf32, #tpu.memory_space<vmem>>) attributes {dimension_semantics = [#tpu.dimension_semantics<parallel>, #tpu.dimension_semantics<parallel>], iteration_bounds = array<i64: 2, 1>, scalar_prefetch = 0 : i64, scratch_operands = 0 : i64, tpu.core_type = #tpu.core_type<tc>, window_params = [{transform_indices = @transform_0, window_bounds = array<i64: 2, 128>}, {transform_indices = @transform_1, window_bounds = array<i64: 2, 128>}, {transform_indices = @transform_2, window_bounds = array<i64: 1, 128>}, {transform_indices = @transform_3, window_bounds = array<i64: 2, 128>}]} {
    %c0 = arith.constant 0 : index
    %c0_0 = arith.constant 0 : index
    %0 = vector.load %arg2[%c0, %c0_0] : memref<2x128xf32, #tpu.memory_space<vmem>>, vector<2x128xf32>
    %c0_1 = arith.constant 0 : index
    %c0_2 = arith.constant 0 : index
    %1 = vector.load %arg3[%c0_1, %c0_2] : memref<2x128xi8, #tpu.memory_space<vmem>>, vector<2x128xi8>
    %c0_i8 = arith.constant 0 : i8
    %2 = vector.broadcast %c0_i8 : i8 to vector<2x128xi8>
    %3 = arith.cmpi ne, %1, %2 : vector<2x128xi8>
    %cst = arith.constant 0.000000e+00 : f32
    %4 = vector.broadcast %cst : f32 to vector<2x128xf32>
    %5 = arith.select %3, %0, %4 : vector<2x128xi1>, vector<2x128xf32>
    %c0_3 = arith.constant 0 : index
    %c0_4 = arith.constant 0 : index
    %6 = vector.load %arg4[%c0_3, %c0_4] : memref<1x128xf32, #tpu.memory_space<vmem>>, vector<1x128xf32>
    %7 = vector.broadcast %6 : vector<1x128xf32> to vector<2x128xf32>
    %8 = arith.addf %5, %7 : vector<2x128xf32>
    %c0_5 = arith.constant 0 : index
    %c0_6 = arith.constant 0 : index
    %9 = vector.load %arg5[%c0_5, %c0_6] : memref<2x128xf32, #tpu.memory_space<vmem>>, vector<2x128xf32>
    tpu.vector_store %arg5[%c0_5, %c0_6], %8 {strides = array<i32>} : memref<2x128xf32, #tpu.memory_space<vmem>>, vector<2x128xf32>,
    return
  }
  func.func @transform_0(%arg0: i32, %arg1: i32) -> (i32, i32) {
    %c0_i32 = arith.constant 0 : i32
    return %arg1, %arg0 : i32, i32
  }
  func.func @transform_1(%arg0: i32, %arg1: i32) -> (i32, i32) {
    %c0_i32 = arith.constant 0 : i32
    return %arg1, %arg0 : i32, i32
  }
  func.func @transform_2(%arg0: i32, %arg1: i32) -> (i32, i32) {
    %c0_i32 = arith.constant 0 : i32
    %c0_i32_0 = arith.constant 0 : i32
    return %c0_i32, %arg0 : i32, i32
  }
  func.func @transform_3(%arg0: i32, %arg1: i32) -> (i32, i32) {
    %c0_i32 = arith.constant 0 : i32
    return %arg1, %arg0 : i32, i32
  }
}

</mosaic_0001>

<bundles_post_ra>
// kernel: tpu_custom_call.1
= control target key start
LH: loop header
LB: loop body
LE: loop exit
PB: predicated region body
PF: predicated region fallthrough
CT: control target
= control target key end

     0   :  { %8 = vsyncpa [#allocation3], 0  ;;  %s780_s0 = inlined_call_operand.hbm [shape: f32[2,256], index: 0, kind: input, shape index: {}]   ;;  %s781_s1 = inlined_call_operand.vmem [shape: s8[2,256], index: 1, kind: input, shape index: {}]   ;;  %s782_s2 = inlined_call_operand.vmem [shape: f32[1,256], index: 2, kind: input, shape index: {}]   ;;  %s783_s3 = inlined_call_operand.hbm [shape: f32[2,256], index: 3, kind: output, shape index: {}]  }
   0x1   :  { %10 = vsyncpa [#allocation3 + $0x1], 0 }
   0x2   :  { %11 = vsyncpa [#allocation4], 0 }
   0x3   :  { %13 = vsyncpa [#allocation4 + $0x1], 0  ;;  %s600_s12 = smov 0   ;;  %s602_s13 = smov 0  }
   0x4   :  { %s604_s14 = smov 0   ;;  %s606_s15 = smov 0  }
   0x5   :  { %s608_s16 = smov 0   ;;  %s610_s17 = smov 0  }
   0x6 LB: > { %s386_s18 = sadd.s32 4294967295, %s575_s17   ;;  %s387_s19 = sadd.s32 4294967294, %s575_s17   ;;  %s575_s17 = sphi %s610_s17, %s19_s17   ;;  %s571_s16 = sphi %s608_s16, %s799_s16   ;;  %s567_s15 = sphi %s606_s15, %s798_s15   ;;  %s563_s14 = sphi %s604_s14, %s797_s14   ;;  %s559_s13 = sphi %s602_s13, %s796_s13   ;;  %s555_s12 = sphi %s600_s12, %s795_s12  }
   0x7   : > { %s31_s20 = sadd.s32 1, %s571_s16  ;;  %s40_s21 = sadd.s32 1, %s563_s14 }
   0x8   : > { %p33_p0 = scmp.ge.s32.totalorder %s31_s20, 2  ;;  %p47_p1 = scmp.ne.s32.totalorder %s563_s14, %s559_s13 }
   0x9   : > { %p48_p2 = scmp.eq.s32.totalorder %s575_s17, 0  ;;  %p53_p3 = scmp.ne.s32.totalorder %s559_s13, %s555_s12 }
   0xa   : > { %s801_s20 = smov (%p33_p0, %s31_s20), 0  ;;  %p54_p5 = scmp.eq.s32.totalorder %s386_s18, 0 }
   0xb   : > { %p641_p4 = por %p48_p2, %p47_p1  ;;  %s36_s23 = ssub.s32 %s571_s16, %s801_s20 }
   0xc   : > { %p133_p6 = scmp.eq.s32.totalorder %s386_s18, 1  ;;  %p38_p7 = scmp.eq.s32.totalorder %s36_s23, 0 }
   0xd   : > { %p647_p8 = por %p54_p5, %p53_p3  ;;  %p139_p10 = scmp.eq.s32.totalorder %s387_s19, 1 }
   0xe   : > { %p651_p9 = por %p133_p6, %p47_p1  ;;  %p412_p13 = scmp.lt.s32.totalorder %s575_s17, 2 }
   0xf   : > { %s656_s26 = scalar_select %p38_p7, %s563_s14, %s40_s21  }
  0x10   : > { %s787_s25 = scalar_select %p651_p9, 1, 0 }
  0x11   : > { %p658_p11 = por %p139_p10, %p53_p3  ;;  %s159_s28 = sand.u32 1, %s563_s14  }
  0x12   : > { %s390_s29 = sshll.u32 %s159_s28, 1  ;;  %s391_s30 = sshll.u32 %s571_s16, 5 }
  0x13   : > { %s788_s27 = scalar_select %p658_p11, 1, 0 }
  0x14   : > { %s669_s6 = scalar_lea.hbm %s780_s0, %s391_s30  ;;  %s163_s7 = scalar_lea.vmem [#allocation2], %s390_s29 }
  0x15   : > { %s172_s8 = sshll.u32 %s163_s7, 4  ;;  %p675_p0 = pnand %p412_p13, %p641_p4  ;;  %s671_s8 = int_to_ptr.vmem [resolvable:$true] %s172_s8 }
  0x16   : > { %s160_s10 = scalar_lea.sflag [#allocation3], %s159_s28  ;;  %s463_s11 = scalar_lea.hbm %s669_s6, 32 }
  0x17   : > { %p464_p3 = scmp.ne.s32.totalorder %s669_s6, %s463_s11  ;;  %p465_p5 = pneg %p675_p0 }
  0x18   : > { %s468_s21 = scalar_lea.hbm %s780_s0, 64  ;;  %p469_p4 = scmp.lt.u32.totalorder %s669_s6, %s780_s0 }
  0x19   : > { %p466_p6 = pnand %p465_p5, %p464_p3  ;;  %p470_p10 = scmp.lt.u32.totalorder %s468_s21, %s463_s11 }
  0x1a   : > { %p472_p12 = scmp.lt.u32.totalorder %s463_s11, %s669_s6 }
  0x1b   : > { %p467_p7 = pneg %p466_p6  ;;  %p471_p13 = por %p470_p10, %p469_p4 }
  0x1d   : > { %p473_p1 = por %p472_p12, %p471_p13 }
  0x1f   : > { %p474_p2 = pnand %p473_p1, %p467_p7 }
  0x21   : > { %477 = shalt.err (!%p474_p2)
}
  0x22   : > { %s478_s28 = scalar_lea.vmem %s671_s8, 32  ;;  %s577_s29 = smov [#allocation2]  }
  0x23   : > { %p479_p3 = scmp.ne.s32.totalorder %s671_s8, %s478_s28  ;;  %s483_s30 = sshll.u32 %s577_s29, 4  ;;  %s484_s30 = int_to_ptr.vmem [resolvable:$false] %s483_s30 }
  0x24   : > { %s485_s4 = scalar_lea.vmem %s484_s30, 64  ;;  %p486_p9 = scmp.lt.s32.totalorder %s671_s8, %s484_s30 }
  0x25   : > { %p481_p6 = pnand %p479_p3, %p465_p5  ;;  %p487_p4 = scmp.lt.s32.totalorder %s485_s4, %s478_s28 }
  0x27   : > { %p482_p11 = pneg %p481_p6  ;;  %p488_p10 = por %p487_p4, %p486_p9 }
  0x29   : > { %p489_p12 = pnand %p488_p10, %p482_p11 }
  0x2b   : > { %492 = shalt.err (!%p489_p12)
}
  0x2c   : > { %407 = dma.hbm_to_vmem [thread:$0]  (!%p675_p0), %s669_s6, 32, %s671_s8, %s160_s10  }
  0x2d   : > { %p790_p1 = scmp.lt.s32.totalorder %s575_s17, 3  ;;  %p791_p2 = scmp.ge.s32.totalorder %s575_s17, 1 }
  0x2f   : > { %p194_p5 = pnand %p791_p2, %p790_p1 }
  0x30   : > { %s711_s5 = sand.u32 (!%p194_p5), 1, %s559_s13  }
  0x31   : > { %197 = sbr.rel (%p194_p5) target bundleno = 85 (0x55), region = 32  ;;  %s393_s7 = sshll.u32 (!%p194_p5), %s711_s5, 1 }
  0x32   : > { %s200_s11 = scalar_lea.sflag (!%p194_p5), [#allocation3], %s711_s5  ;;  %s203_s18 = scalar_lea.vmem (!%p194_p5), [#allocation2], %s393_s7 }
  0x38   : > { %546 = dma.done.wait (%p647_p8), %s200_s11, 32  }
  0x39   : > { %548 = vsyncadd (%p647_p8), %s200_s11, 4294967264  ;;  %p238_p9 = scmp.lt.s32.totalorder %s567_s15, 1  ;;  %v578_v1 = vmov 0   ;;  %v248_v3 = vld [vmem:[%s203_s18] sm:$0x3]  ;;  %s235_s24 = scalar_lea.vmem [#allocation5], %s393_s7 }
  0x3a   : > { %s280_s23 = sshll.u32 %s235_s24, 4  ;;  %s397_s28 = sshll.u32 %s567_s15, 5  ;;  %s728_s23 = int_to_ptr.vmem [resolvable:$true] %s280_s23 }
  0x3b   : > { %s239_s6 = scalar_select %p238_p9, %s567_s15, 1 }
  0x3c   : > { %s733_s4 = scalar_lea.hbm %s783_s3, %s397_s28  ;;  %s265_s11 = scalar_lea.sflag [#allocation4], %s711_s5 }
  0x3d   : > { %s242_s10 = scalar_lea.vmem %s781_s1, %s239_s6  ;;  %s245_s22 = scalar_lea.vmem %s782_s2, %s239_s6 }
  0x3e   : > { %v249_v0 = vld [vmem:[%s242_s10] sm:$0x1]  ;;  %s493_s18 = scalar_lea.vmem %s728_s23, 32  ;;  %p792_p11 = scmp.ne.s32.totalorder %s787_s25, 0 }
  0x3f   : > { %vm250_vm0 = vnez %v249_v0  ;;  %v395_v5 = vld [vmem:[%s245_s22] ss:$0 sm:$0xff]  ;;  %p494_p8 = scmp.ne.s32.totalorder %s728_s23, %s493_s18  ;;  %s579_s15 = smov [#allocation5]  }
  0x40   : > { %v251_v2 = vsel %vm250_vm0, 16843009, %v578_v1  ;;  %s497_s7 = sshll.u32 %s579_s15, 4  ;;  %s498_s7 = int_to_ptr.vmem [resolvable:$false] %s497_s7 }
  0x41   : > { %v252_v4 = vunpack.c.0.s8 %v251_v2  ;;  %p495_p0 = pnand %p494_p8, %p792_p11  ;;  %s499_s6 = scalar_lea.vmem %s498_s7, 64 }
  0x42   : > { %p500_p13 = scmp.lt.s32.totalorder %s728_s23, %s498_s7  ;;  %p501_p3 = scmp.lt.s32.totalorder %s499_s6, %s493_s18 }
  0x43   : > { %vm253_vm1 = vcmp.ne.s32.totalorder %v252_v4, 0  ;;  %p496_p7 = pneg %p495_p0 }
  0x44   : > { %v254_v6 = vsel %vm253_vm1, %v248_v3, 0.0  ;;  %p502_p6 = por %p501_p3, %p500_p13 }
  0x45   : > { %v262_v7 = vadd.f32 %v395_v5, %v254_v6 }
  0x46   : > { %p503_p4 = pnand %p502_p6, %p496_p7 }
  0x47   : > { %263 = vst [vmem:[%s235_s24] sm:$0x3] %v262_v7 }
  0x48   : > { %506 = shalt.err (!%p503_p4)
}
  0x49   : > { %s507_s5 = scalar_lea.hbm %s733_s4, 32  ;;  %s511_s10 = scalar_lea.hbm %s783_s3, 64 }
  0x4a   : > { %p508_p10 = scmp.ne.s32.totalorder %s733_s4, %s507_s5  ;;  %p512_p2 = scmp.lt.u32.totalorder %s733_s4, %s783_s3 }
  0x4b   : > { %p513_p5 = scmp.lt.u32.totalorder %s511_s10, %s507_s5  ;;  %p515_p8 = scmp.lt.u32.totalorder %s507_s5, %s733_s4 }
  0x4c   : > { %p509_p12 = pnand %p508_p10, %p792_p11 }
  0x4d   : > { %p514_p9 = por %p513_p5, %p512_p2 }
  0x4e   : > { %p510_p1 = pneg %p509_p12 }
  0x4f   : > { %p516_p0 = por %p515_p8, %p514_p9 }
  0x51   : > { %p517_p7 = pnand %p516_p0, %p510_p1 }
  0x53   : > { %520 = shalt.err (!%p517_p7)
}
  0x54   : > { %402 = dma.vmem_to_hbm [thread:$0]  (%p792_p11), %s728_s23, 32, %s733_s4, %s265_s11  }
  0x55 PF: > { %s292_s22 = sand.u32 1, %s555_s12   ;;  %p793_p13 = scmp.ne.s32.totalorder %s788_s27, 0 }
  0x56   : > { %p794_p3 = scmp.ge.s32.totalorder %s575_s17, 2  ;;  %s293_s24 = scalar_lea.sflag [#allocation4], %s292_s22 }
  0x58   : > { %p409_p6 = pnand %p794_p3, %p793_p13 }
  0x5a   : > { %550 = dma.done.wait (!%p409_p6), %s293_s24, 32  }
  0x5b   : > { %552 = vsyncadd (!%p409_p6), %s293_s24, 4294967264  ;;  %s19_s17 = sadd.s32 1, %s575_s17   ;;  %s795_s12 = smov %s559_s13 }
  0x5c   : > { %p16_p4 = scmp.ge.s32.totalorder %s19_s17, 4   ;;  %s796_s13 = smov %s563_s14 }
  0x5d   : > { %s797_s14 = smov %s656_s26  ;;  %s798_s15 = smov %s571_s16 }
  0x5e   : > { %s799_s16 = smov %s801_s20  ;;  %18 = sbr.rel (!%p16_p4) target bundleno = 6 (0x6), region = 83 }
  0x65   :  { %298 = vsyncpa [#allocation3], 1 }
  0x66   :  { %300 = vsyncpa [#allocation3 + $0x1], 1 }
  0x67   :  { %301 = vsyncpa [#allocation4], 1 }
  0x68   :  { %303 = vsyncpa [#allocation4 + $0x1], 1 }

</bundles_post_ra>
